<compile_context>
chip_gen: v7x
topology: tpu7x:2x2x1
jax: 0.10.0
libtpu: 0.0.40
codegen_flags: <defaults>
</compile_context>

<pallas_src>
import functools

import jax
import jax.numpy as jnp
from jax.experimental import pallas as pl
from jax.experimental.pallas import tpu as pltpu


def _round_up(x, m):
    return ((x + m - 1) // m) * m


def _cdiv(a, b):
    return (a + b - 1) // b


def _sublane_multiple(dtype):
    # f32 -> 8, bf16 -> 16, int8/fp8 -> 32 (sub-32-bit dtypes pack along sublanes).
    return max(8, 32 // jnp.dtype(dtype).itemsize)


def _largest_aligned_divisor(dim, target, align):
    """Largest multiple of `align` that divides `dim` and is <= max(target, align).
    `dim` must itself be a multiple of `align`."""
    q = dim // align
    for d in range(min(q, max(target // align, 1)), 0, -1):
        if q % d == 0:
            return d * align
    return align


@functools.cache
def _vmem_cap_bytes():
    """~80% of physical VMEM (leave headroom for compiler-internal scratch)."""
    try:
        return int(pltpu.get_tpu_info().vmem_capacity_bytes * 0.8)
    except Exception:
        return 48 * 1024 * 1024  # conservative, v7x-safe fallback


# ----------------------------- kernels ---------------------------------------

def _matmul_kernel_f32_out(x_ref, wt_ref, o_ref):
    """f32 output: accumulate directly into the resident output block."""
    @pl.when(pl.program_id(2) == 0)
    def _():
        o_ref[...] = jnp.zeros_like(o_ref)

    x = x_ref[...]
    w = wt_ref[...]
    if x.dtype != w.dtype:          # opt-in bf16 MXU path: cast the x tile
        x = x.astype(w.dtype)
    o_ref[...] += jnp.dot(x, w, preferred_element_type=jnp.float32)


def _matmul_kernel_acc(x_ref, wt_ref, o_ref, acc_ref):
    """Low-precision output: f32 accumulator scratch, cast on the last K step."""
    @pl.when(pl.program_id(2) == 0)
    def _():
        acc_ref[...] = jnp.zeros_like(acc_ref)

    x = x_ref[...]
    w = wt_ref[...]
    if x.dtype != w.dtype:
        x = x.astype(w.dtype)
    acc_ref[...] += jnp.dot(x, w, preferred_element_type=jnp.float32)

    @pl.when(pl.program_id(2) == pl.num_programs(2) - 1)
    def _():
        o_ref[...] = acc_ref[...].astype(o_ref.dtype)


# ----------------------------- jitted wrapper ---------------------------------

@functools.partial(jax.jit, static_argnames=("N", "tm", "tn", "tk", "out_dtype"))
def _linear_matmul(x2d, w_t_padded, *, N, tm, tn, tk, out_dtype):
    """x2d: [M, K]. w_t_padded: [Kp, Np] (zero-padded, 128-aligned), tk | Kp."""
    M, K = x2d.shape
    Kp, Np = w_t_padded.shape

    # K must be fully zero-padded: garbage in the reduction would corrupt valid
    # outputs. (M / N edge blocks may read garbage: those rows/cols are masked
    # on writeback and never feed valid results.)
    if Kp != K:
        x2d = jnp.pad(x2d, ((0, 0), (0, Kp - K)))

    grid_m = _cdiv(M, tm)
    grid_n = _cdiv(Np, tn)
    grid_k = Kp // tk   # exact: tk divides Kp by construction

    use_direct_out = jnp.dtype(out_dtype) == jnp.dtype(jnp.float32)
    kernel = _matmul_kernel_f32_out if use_direct_out else _matmul_kernel_acc
    scratch = [] if use_direct_out else [pltpu.VMEM((tm, tn), jnp.float32)]

    in_bytes = jnp.dtype(x2d.dtype).itemsize
    w_bytes = jnp.dtype(w_t_padded.dtype).itemsize
    out_bytes = jnp.dtype(out_dtype).itemsize

    # Double-buffered input tiles + double-buffered output tile (+ accumulator),
    # 2x headroom, capped at ~80% of physical VMEM for this generation.
    need = (2 * (tm * tk * in_bytes + tk * tn * w_bytes)
            + 2 * tm * tn * out_bytes
            + (0 if use_direct_out else tm * tn * 4))
    vmem_limit = int(min(max(2 * need, 32 * 1024 * 1024), _vmem_cap_bytes()))

    cost = pl.CostEstimate(
        flops=2 * M * Np * Kp,
        transcendentals=0,
        bytes_accessed=(M * Kp * in_bytes * grid_n          # x re-read per N tile
                        + Kp * Np * w_bytes * grid_m        # W re-read per M tile
                        + M * Np * out_bytes),
    )

    y = pl.pallas_call(
        kernel,
        out_shape=jax.ShapeDtypeStruct((M, Np), out_dtype),
        grid_spec=pltpu.PrefetchScalarGridSpec(
            num_scalar_prefetch=0,
            grid=(grid_m, grid_n, grid_k),
            in_specs=[
                pl.BlockSpec((tm, tk), lambda i, j, k: (i, k)),
                # TODO(synk): sweep pipeline_mode=pl.Buffered(3) on the weight
                # stream for decode-style (small-M) calls once measured on HW.
                pl.BlockSpec((tk, tn), lambda i, j, k: (k, j)),
            ],
            out_specs=pl.BlockSpec((tm, tn), lambda i, j, k: (i, j)),
            scratch_shapes=scratch,
        ),
        compiler_params=pltpu.CompilerParams(
            dimension_semantics=("parallel", "parallel", "arbitrary"),
            vmem_limit_bytes=vmem_limit,
        ),
        cost_estimate=cost,
    )(x2d, w_t_padded)

    if Np != N:
        y = y[:, :N]
    return y


# ----------------------------- module -----------------------------------------

class Linear:
    """JAX/Pallas equivalent of the PyTorch Linear module (no bias): y = x @ W.T."""

    _TM_TARGET = 512    # rows of x per tile
    _TN_TARGET = 512    # output features per tile (lane-aligned)
    _TK_TARGET = 1024   # reduction depth per tile (fewer K grid steps)

    def __init__(self, in_features, out_features, Winit=None, dtype=jnp.float32,
                 key=None, mxu_dtype=None):
        self.in_features = in_features
        self.out_features = out_features
        self.mxu_dtype = mxu_dtype  # e.g. jnp.bfloat16 (numerics-approval needed)

        if Winit is not None:
            Winit = jnp.asarray(Winit, dtype=dtype)
            assert Winit.shape == (out_features, in_features), "inconsistent shapes"
            self.weight = Winit
        else:
            if key is None:
                key = jax.random.PRNGKey(0)
            # nn.init.trunc_normal_ defaults: mean 0, std 1, truncated to [-2, 2].
            self.weight = jax.random.truncated_normal(
                key, -2.0, 2.0, (out_features, in_features), dtype=dtype
            )

        # Cache the transposed + zero-padded weight ONCE (128-aligned in both
        # dims) so the per-call path never re-materializes a transposed copy.
        Kp = _round_up(in_features, 128)
        Np = _round_up(out_features, 128)
        w_t = self.weight.T  # [d_in, d_out]
        if (Kp != in_features) or (Np != out_features):
            w_t = jnp.pad(w_t, ((0, Kp - in_features), (0, Np - out_features)))
        if mxu_dtype is not None:
            w_t = w_t.astype(mxu_dtype)
        self.weight_t_padded = w_t
        self._Kp, self._Np = Kp, Np

        # tk must divide Kp exactly so the K reduction never covers out-of-bounds
        # (garbage) data; the last N block may be partial (masked writeback).
        self._tk = _largest_aligned_divisor(Kp, self._TK_TARGET, 128)
        self._tn = min(_round_up(self._TN_TARGET, 128), Np)

    def __call__(self, x):
        # x: [..., d_in]  ->  y: [..., d_out]
        *lead, d_in = x.shape
        assert d_in == self.in_features
        M = 1
        for d in lead:
            M *= d
        x2d = x.reshape(M, d_in)
        out_dtype = x2d.dtype

        sub = _sublane_multiple(x2d.dtype)
        tm = min(_round_up(self._TM_TARGET, sub), _round_up(max(M, 1), sub))
        tn = self._tn
        # v7x megacore: guarantee >= 2 blocks on a 'parallel' axis when possible
        # so both TensorCores get work on small / decode-style calls.
        if _cdiv(M, tm) == 1 and _cdiv(self._Np, tn) == 1 and tn % 256 == 0:
            tn //= 2

        y2d = _linear_matmul(
            x2d, self.weight_t_padded,
            N=self.out_features, tm=tm, tn=tn, tk=self._tk, out_dtype=out_dtype,
        )
        return y2d.reshape(*lead, self.out_features)


if __name__ == "__main__":
    key = jax.random.PRNGKey(0)
    k_x, k_w, k_x2, k_w2, k_x3, k_w3 = jax.random.split(key, 6)
    hi = jax.lax.Precision.HIGHEST

    # Small, aligned-ish case.
    batch, seq, d_in, d_out = 2, 8, 32, 64
    x = jax.random.normal(k_x, (batch, seq, d_in), dtype=jnp.float32)
    layer = Linear(d_in, d_out, dtype=jnp.float32, key=k_w)
    y = jax.block_until_ready(layer(x))
    y_ref = jnp.einsum("oi,...i->...o", layer.weight, x, precision=hi)
    assert y.shape == (batch, seq, d_out)
    assert jnp.allclose(y, y_ref, atol=1e-4, rtol=1e-4), "mismatch (aligned)"

    # Awkward dims exercise the K/N zero-padding path.
    b2, s2, di2, do2 = 2, 7, 40, 48
    x2 = jax.random.normal(k_x2, (b2, s2, di2), dtype=jnp.float32)
    layer2 = Linear(di2, do2, dtype=jnp.float32, key=k_w2)
    y2 = jax.block_until_ready(layer2(x2))
    y2_ref = jnp.einsum("oi,...i->...o", layer2.weight, x2, precision=hi)
    assert y2.shape == (b2, s2, do2)
    assert jnp.allclose(y2, y2_ref, atol=1e-4, rtol=1e-4), "mismatch (padded)"

    # 128-aligned features with a ragged M: exercises the copy-free partial
    # last-M-block path (no per-call pad of x, no output slice).
    b3, s3, di3, do3 = 2, 5, 256, 384
    x3 = jax.random.normal(k_x3, (b3, s3, di3), dtype=jnp.float32)
    layer3 = Linear(di3, do3, dtype=jnp.float32, key=k_w3)
    y3 = jax.block_until_ready(layer3(x3))
    y3_ref = jnp.einsum("oi,...i->...o", layer3.weight, x3, precision=hi)
    assert y3.shape == (b3, s3, do3)
    assert jnp.allclose(y3, y3_ref, atol=1e-4, rtol=1e-4), "mismatch (ragged M)"

    print("KERNEL_OK")
</pallas_src>

<mosaic_0001>
module attributes {stable_mosaic.version = 11 : i64} {
  func.func @_matmul_kernel_f32_out(%arg0: i32, %arg1: i32, %arg2: i32, %arg3: memref<16x128xf32, #tpu.memory_space<vmem>>, %arg4: memref<128x128xf32, #tpu.memory_space<vmem>>, %arg5: memref<16x128xf32, #tpu.memory_space<vmem>>) attributes {dimension_semantics = [#tpu.dimension_semantics<parallel>, #tpu.dimension_semantics<parallel>, #tpu.dimension_semantics<arbitrary>], iteration_bounds = array<i64: 1, 1, 1>, scalar_prefetch = 0 : i64, scratch_operands = 0 : i64, tpu.core_type = #tpu.core_type<tc>, window_params = [{transform_indices = @transform_0, window_bounds = array<i64: 16, 128>}, {transform_indices = @transform_1, window_bounds = array<i64: 128, 128>}, {transform_indices = @transform_2, window_bounds = array<i64: 16, 128>}]} {
    %c0_i32 = arith.constant 0 : i32
    %0 = arith.cmpi eq, %arg2, %c0_i32 : i32
    %1 = arith.extui %0 : i1 to i32
    %c0_i32_0 = arith.constant 0 : i32
    %2 = arith.cmpi ne, %1, %c0_i32_0 : i32
    scf.if %2 {
      %cst_8 = arith.constant 0.000000e+00 : f32
      %9 = vector.broadcast %cst_8 : f32 to vector<16x128xf32>
      %c0_9 = arith.constant 0 : index
      %c0_10 = arith.constant 0 : index
      %10 = vector.load %arg5[%c0_9, %c0_10] : memref<16x128xf32, #tpu.memory_space<vmem>>, vector<16x128xf32>
      tpu.vector_store %arg5[%c0_9, %c0_10], %9 {strides = array<i32>} : memref<16x128xf32, #tpu.memory_space<vmem>>, vector<16x128xf32>,
    } else {
    }
    %c0 = arith.constant 0 : index
    %c0_1 = arith.constant 0 : index
    %3 = vector.load %arg3[%c0, %c0_1] : memref<16x128xf32, #tpu.memory_space<vmem>>, vector<16x128xf32>
    %c0_2 = arith.constant 0 : index
    %c0_3 = arith.constant 0 : index
    %4 = vector.load %arg4[%c0_2, %c0_3] : memref<128x128xf32, #tpu.memory_space<vmem>>, vector<128x128xf32>
    %c0_4 = arith.constant 0 : index
    %c0_5 = arith.constant 0 : index
    %5 = vector.load %arg5[%c0_4, %c0_5] : memref<16x128xf32, #tpu.memory_space<vmem>>, vector<16x128xf32>
    %cst = arith.constant dense<0.000000e+00> : vector<16x128xf32>
    %6 = tpu.matmul %3, %4, %cst {dimension_numbers = #tpu.dot_dimension_numbers<[1], [0], [0], [1], [0, 0, 1, 1], [], []>} : vector<16x128xf32>, vector<128x128xf32>, vector<16x128xf32> -> vector<16x128xf32>
    %7 = arith.addf %5, %6 : vector<16x128xf32>
    %c0_6 = arith.constant 0 : index
    %c0_7 = arith.constant 0 : index
    %8 = vector.load %arg5[%c0_6, %c0_7] : memref<16x128xf32, #tpu.memory_space<vmem>>, vector<16x128xf32>
    tpu.vector_store %arg5[%c0_6, %c0_7], %7 {strides = array<i32>} : memref<16x128xf32, #tpu.memory_space<vmem>>, vector<16x128xf32>,
    return
  }
  func.func @transform_0(%arg0: i32, %arg1: i32, %arg2: i32) -> (i32, i32) {
    %c0_i32 = arith.constant 0 : i32
    return %arg0, %arg2 : i32, i32
  }
  func.func @transform_1(%arg0: i32, %arg1: i32, %arg2: i32) -> (i32, i32) {
    %c0_i32 = arith.constant 0 : i32
    return %arg2, %arg1 : i32, i32
  }
  func.func @transform_2(%arg0: i32, %arg1: i32, %arg2: i32) -> (i32, i32) {
    %c0_i32 = arith.constant 0 : i32
    return %arg0, %arg1 : i32, i32
  }
}

</mosaic_0001>

<bundles_post_ra>
// kernel: _linear_matmul.1
= control target key start
LH: loop header
LB: loop body
LE: loop exit
PB: predicated region body
PF: predicated region fallthrough
CT: control target
= control target key end

     0   :  { %7 = vsyncpa [#allocation3], 0  ;;  %s341_s0 = inlined_call_operand.vmem [shape: f32[16,128], index: 0, kind: input, shape index: {}]   ;;  %s342_s1 = inlined_call_operand.hbm [shape: f32[128,128], index: 1, kind: input, shape index: {}]   ;;  %s343_s2 = inlined_call_operand.hbm [shape: f32[16,128], index: 2, kind: output, shape index: {}]  }
   0x1   :  { %8 = vsyncpa [#allocation4], 0  ;;  %s286_s9 = smov [#allocation2]   ;;  %s238_s13 = scalar_lea.hbm %s342_s1, 2048 }
   0x2   :  { %s16_s10 = sshll.u32 %s286_s9, 4  ;;  %p239_p0 = scmp.ne.s32.totalorder %s342_s1, %s238_s13  ;;  %s17_s10 = int_to_ptr.vmem [resolvable:$true] %s16_s10 }
   0x3   :  { %p242_p1 = scmp.lt.u32.totalorder %s238_s13, %s342_s1 }
   0x5   :  { %p244_p2 = pnand %p242_p1, %p239_p0 }
   0x7   :  { %247 = shalt.err (!%p244_p2)
}
   0x8   :  { %s248_s18 = scalar_lea.vmem %s17_s10, 2048  ;;  %p253_p4 = scmp.lt.s32.totalorder %s17_s10, %s17_s10 }
   0x9   :  { %p249_p3 = scmp.ne.s32.totalorder %s17_s10, %s248_s18  ;;  %p254_p5 = scmp.lt.s32.totalorder %s248_s18, %s248_s18 }
   0xb   :  { %p255_p6 = por %p254_p5, %p253_p4 }
   0xd   :  { %p256_p7 = pnand %p255_p6, %p249_p3 }
   0xf   :  { %259 = shalt.err (!%p256_p7)
}
  0x10   :  { %s287_s19 = smov 128   ;;  %s288_s20 = smov 8  }
  0x11   :  { %22 = dma.hbm_to_vmem [thread:$0]  %s342_s1, 2048, %s17_s10, [#allocation3], %s287_s19, %s287_s19, %s288_s20  }
  0x12   :  { %282 = dma.done.wait [#allocation3], 2048  }
  0x13   :  { %283 = vsyncadd [#allocation3], 4294965248  ;;  %v34_v0 = vld [vmem:[#allocation2] sm:$0xff]  ;;  %v35_v1 = vld [vmem:[#allocation2 + $0x8] sm:$0xff]  ;;  %s289_s26 = smov [#allocation5]  }
  0x14   :  { %v36_v2 = vld [vmem:[#allocation2 + $0x10] sm:$0xff]  ;;  %v201_v3 = vpack.c.bf16 %v35_v1, %v34_v0  ;;  %v37_v4 = vld [vmem:[#allocation2 + $0x18] sm:$0xff]  ;;  %v38_v6 = vld [vmem:[#allocation2 + $0x20] sm:$0xff]  ;;  %s136_s27 = sshll.u32 %s289_s26, 4  ;;  %s137_s27 = int_to_ptr.vmem [resolvable:$true] %s136_s27 }
  0x15   :  { %v205_v5 = vpack.c.bf16 %v37_v4, %v36_v2  ;;  %v39_v7 = vld [vmem:[#allocation2 + $0x28] sm:$0xff]  ;;  %v32_v9 = vld [vmem:[%s341_s0] sm:$0xff]  ;;  %v40_v10 = vld [vmem:[#allocation2 + $0x30] sm:$0xff]  ;;  %s260_s28 = scalar_lea.vmem %s137_s27, 256  ;;  %p265_p9 = scmp.lt.s32.totalorder %s137_s27, %s137_s27 }
  0x16   :  { %202 = vmatprep.subr.bf16.mxu0 %v201_v3  ;;  %v209_v8 = vpack.c.bf16 %v39_v7, %v38_v6  ;;  %v41_v11 = vld [vmem:[#allocation2 + $0x38] sm:$0xff]  ;;  %198 = vmatprep.mubr.f32.mxu0 %v32_v9  ;;  %v42_v13 = vld [vmem:[#allocation2 + $0x40] sm:$0xff]  ;;  %v43_v14 = vld [vmem:[#allocation2 + $0x48] sm:$0xff]  ;;  %p261_p8 = scmp.ne.s32.totalorder %s137_s27, %s260_s28  ;;  %p266_p10 = scmp.lt.s32.totalorder %s260_s28, %s260_s28 }
  0x17   :  { %204 = vmatpush3.bf16.msra.mxu0 %v201_v3  ;;  %v213_v12 = vpack.c.bf16 %v41_v11, %v40_v10  ;;  %v217_v15 = vpack.c.bf16 %v43_v14, %v42_v13  ;;  %v44_v16 = vld [vmem:[#allocation2 + $0x50] sm:$0xff]  ;;  %v45_v17 = vld [vmem:[#allocation2 + $0x58] sm:$0xff]  ;;  %v46_v19 = vld [vmem:[#allocation2 + $0x60] sm:$0xff] }
  0x18   :  { %206 = vmatprep.subr.bf16.mxu0 %v205_v5  ;;  %v221_v18 = vpack.c.bf16 %v45_v17, %v44_v16  ;;  %v47_v20 = vld [vmem:[#allocation2 + $0x68] sm:$0xff]  ;;  %v48_v22 = vld [vmem:[#allocation2 + $0x70] sm:$0xff]  ;;  %v49_v23 = vld [vmem:[#allocation2 + $0x78] sm:$0xff]  ;;  %p267_p11 = por %p266_p10, %p265_p9 }
  0x19   :  { %v225_v21 = vpack.c.bf16 %v47_v20, %v46_v19  ;;  %v229_v24 = vpack.c.bf16 %v49_v23, %v48_v22  ;;  %v33_v25 = vld [vmem:[%s341_s0 + $0x8] sm:$0xff] }
  0x1a   :  { %p268_p12 = pnand %p267_p11, %p261_p8 }
  0x1b   :  { %208 = vmatpush3.bf16.msra.mxu0 %v205_v5 }
  0x1c   :  { %210 = vmatprep.subr.bf16.mxu0 %v209_v8 }
  0x1f   :  { %212 = vmatpush3.bf16.msra.mxu0 %v209_v8 }
  0x20   :  { %214 = vmatprep.subr.bf16.mxu0 %v213_v12 }
  0x23   :  { %216 = vmatpush3.bf16.msra.mxu0 %v213_v12 }
  0x24   :  { %218 = vmatprep.subr.bf16.mxu0 %v217_v15 }
  0x27   :  { %220 = vmatpush3.bf16.msra.mxu0 %v217_v15 }
  0x28   :  { %222 = vmatprep.subr.bf16.mxu0 %v221_v18 }
  0x2b   :  { %224 = vmatpush3.bf16.msra.mxu0 %v221_v18 }
  0x2c   :  { %226 = vmatprep.subr.bf16.mxu0 %v225_v21 }
  0x2f   :  { %228 = vmatpush3.bf16.msra.mxu0 %v225_v21 }
  0x30   :  { %230 = vmatprep.subr.bf16.mxu0 %v229_v24 }
  0x33   :  { %232 = vmatpush3.bf16.msra.mxu0 %v229_v24 }
  0x36   :  { %199 = vmatmul.mubr.f32.vlgmr.msra.gmra.mrb[0].mxu0 %v33_v25 }
 0x109   :  { %v200_v26 = vpop.f32.mrb[0].mxu0 }
 0x10a   :  { %v118_v27 = vpop.f32.mrb[1].mxu0  ;;  %130 = vst [vmem:[#allocation5 + $0x8] sm:$0xff] %v200_v26 }
 0x10b   :  { %129 = vst [vmem:[#allocation5] sm:$0xff] %v118_v27 }
 0x10c   :  { %271 = shalt.err (!%p268_p12)
}
 0x10d   :  { %s272_s3 = scalar_lea.hbm %s343_s2, 256 }
 0x10e   :  { %p273_p13 = scmp.ne.s32.totalorder %s343_s2, %s272_s3  ;;  %p276_p0 = scmp.lt.u32.totalorder %s272_s3, %s343_s2 }
 0x110   :  { %p278_p1 = pnand %p276_p0, %p273_p13 }
 0x112   :  { %281 = shalt.err (!%p278_p1)
}
 0x113   :  { %142 = dma.vmem_to_hbm [thread:$0]  %s137_s27, 256, %s343_s2, [#allocation4], %s287_s19, %s287_s19, %s288_s20  }
 0x114   :  { %284 = dma.done.wait [#allocation4], 256  }
 0x115   :  { %285 = vsyncadd [#allocation4], 4294967040 }
 0x116   :  { %146 = vsyncpa [#allocation3], 1 }
 0x117   :  { %147 = vsyncpa [#allocation4], 1 }

</bundles_post_ra>
